<compile_context>
chip_gen: v6e
topology: v6e:2x2x1
jax: 0.10.0
libtpu: 0.0.40
codegen_flags: <defaults>
</compile_context>

<pallas_src>
import functools

import jax
import jax.numpy as jnp
from jax.experimental import pallas as pl
from jax.experimental.pallas import tpu as pltpu


# --------------------------------------------------------------------------
# Kernel
# --------------------------------------------------------------------------
def _gated_mlp_kernel(x_ref, wg_ref, bg_ref, wv_ref, bv_ref, w2_ref, b2_ref,
                      *rest, has_adjust: bool):
    """One (batch, spatial-tile) block of the SwiGLU MLP, channel-major.

    x_ref : (1, D_in, TN)  input block (original dtype, e.g. f32)
    wg_ref: (H, D_in)      fc1 gate  weight (bf16, resident, single-buffered)
    bg_ref: (H, 1)         fc1 gate  bias   (f32)
    wv_ref: (H, D_in)      fc1 value weight (bf16)
    bv_ref: (H, 1)         fc1 value bias   (f32)
    w2_ref: (H, H)         fc2 weight       (bf16)
    b2_ref: (H, 1)         fc2 bias         (f32)
    [wa_ref: (H, D_in), ba_ref: (H, 1)]     adjust_dim, only when D_in != H
    o_ref : (1, H, TN)     output block
    """
    if has_adjust:
        wa_ref, ba_ref, o_ref = rest
    else:
        (o_ref,) = rest

    x = x_ref[0]                              # (D_in, TN), lane-dense on TN
    x_mx = x.astype(jnp.bfloat16)             # bf16 MXU operands, f32 accumulation

    gate = jnp.dot(wg_ref[...], x_mx,
                   preferred_element_type=jnp.float32) + bg_ref[...]
    value = jnp.dot(wv_ref[...], x_mx,
                    preferred_element_type=jnp.float32) + bv_ref[...]

    # SwiGLU epilogue: SiLU(gate) * value, in f32 (EUP sigmoid + VPU muls).
    gated = gate * jax.nn.sigmoid(gate) * value

    # TODO(synk): nn.Dropout(p=0.15) is identity in eval/inference mode; not applied.

    out = jnp.dot(w2_ref[...], gated.astype(jnp.bfloat16),
                  preferred_element_type=jnp.float32) + b2_ref[...]

    if has_adjust:
        res = jnp.dot(wa_ref[...], x_mx,
                      preferred_element_type=jnp.float32) + ba_ref[...]
    else:
        # adjust_dim == nn.Identity(): exact f32 residual, no identity matmul.
        res = x.astype(jnp.float32)

    o_ref[0] = (out + res).astype(o_ref.dtype)


# --------------------------------------------------------------------------
# Generation-aware budgeting / tiling helpers
# --------------------------------------------------------------------------
def _vmem_budget_bytes() -> int:
    """Scoped-VMEM budget derived from the actual chip generation."""
    try:
        cap = int(pltpu.get_tpu_info().vmem_capacity_bytes)
    except Exception:
        cap = 64 * 1024 * 1024            # conservative: v7x per-TC VMEM
    # Leave headroom for Mosaic-internal scratch / alignment.
    # v7x (64 MiB) -> 56 MiB; v5e/v6e (128 MiB) -> 112 MiB.
    return min(cap - 8 * 1024 * 1024, (cap * 7) // 8)


def _pick_tile_n(n_pad: int, batch: int, avail_bytes: int,
                 per_lane_bytes: int, *, max_lanes: int = 2048) -> int:
    """Largest 128-multiple divisor of n_pad that fits the per-tile budget.

    Prefers multiples of 256 (v6e/v7x MXU is 2x256^2) and shrinks so that
    batch * (n_pad // tile) gives both v7x TensorCores work when possible.
    """
    fit = (avail_bytes // max(per_lane_bytes, 1)) // 128 * 128
    cap = max(128, min(fit, max_lanes, n_pad))
    cands = [t for t in range(128, cap + 1, 128) if n_pad % t == 0]
    if not cands:
        cands = [128]
    pick = cands[-1]
    for t in cands:                        # largest 256-multiple, if any
        if t % 256 == 0:
            pick = t
    # Megacore: aim for >= 4 grid steps so the (parallel, parallel) grid
    # actually shards across 2 TensorCores on v7x.
    while batch * (n_pad // pick) < 4:
        smaller = [t for t in cands if t < pick]
        if not smaller:
            break
        pick = smaller[-1]
    return pick


# --------------------------------------------------------------------------
# Weight preparation (one-time, out of the hot path)
# --------------------------------------------------------------------------
def prepare_params(params, *, weight_dtype=jnp.bfloat16):
    """Split fc1 into gate/value halves, cast matmul weights to bf16 and
    reshape biases to (H, 1) f32 — once, not on every forward call."""
    w1, b1, w2, b2 = params["w1"], params["b1"], params["w2"], params["b2"]
    H = w2.shape[0]
    prepped = {
        "wg": w1[:H].astype(weight_dtype),
        "wv": w1[H:].astype(weight_dtype),
        "bg": b1[:H].reshape(H, 1).astype(jnp.float32),
        "bv": b1[H:].reshape(H, 1).astype(jnp.float32),
        "w2": w2.astype(weight_dtype),
        "b2": b2.reshape(H, 1).astype(jnp.float32),
    }
    if "wa" in params:
        prepped["wa"] = params["wa"].astype(weight_dtype)
        prepped["ba"] = params["ba"].reshape(H, 1).astype(jnp.float32)
    return prepped


# --------------------------------------------------------------------------
# Wrapper
# --------------------------------------------------------------------------
def gated_mlp(x_nchw, prepped, *, tile_n=None, vmem_limit_bytes=None):
    """x_nchw: [B, D_in, N, 1] -> [B, H, N, 1] (eval-mode forward).

    `prepped` must come from prepare_params() so weight slicing / casting is
    not repeated per call.
    """
    B, D_in, N, one = x_nchw.shape
    assert one == 1
    wg, wv, w2 = prepped["wg"], prepped["wv"], prepped["w2"]
    bg, bv, b2 = prepped["bg"], prepped["bv"], prepped["b2"]
    H = w2.shape[0]
    assert wg.shape == (H, D_in) and wv.shape == (H, D_in), (wg.shape, wv.shape)
    has_adjust = "wa" in prepped
    assert has_adjust == (D_in != H)

    x_itemsize = jnp.dtype(x_nchw.dtype).itemsize
    out_itemsize = x_itemsize
    w_itemsize = jnp.dtype(wg.dtype).itemsize

    # ---- generation-aware VMEM budget -----------------------------------
    budget = _vmem_budget_bytes() if vmem_limit_bytes is None else int(vmem_limit_bytes)
    n_bias = 4 if has_adjust else 3
    weight_elems = 2 * H * D_in + H * H + (H * D_in if has_adjust else 0)
    # Resident operands are single-buffered (pl.Buffered(1)); each (H, 1) f32
    # bias still lane-pads to (H, 128) in VMEM.
    fixed_bytes = weight_elems * w_itemsize + n_bias * H * 128 * 4
    # Per-lane cost of a spatial tile: double-buffered x / out windows, the
    # in-kernel bf16 copy of x, and f32 intermediates (gate/value/gated/out).
    per_lane = (2 * D_in * x_itemsize + 2 * H * out_itemsize
                + D_in * 2 + 4 * H * 4)
    avail = budget - fixed_bytes
    if avail < 128 * per_lane:
        # TODO(synk): add a K/H-tiled reduction variant for weights exceeding
        # VMEM residency; this kernel requires full weight residency.
        raise NotImplementedError(
            f"GatedMLP weights need {fixed_bytes / 2**20:.1f} MiB resident; "
            f"does not fit the {budget / 2**20:.1f} MiB VMEM budget.")

    # ---- pad N up to a 128-lane multiple (lane-dense, unmasked stores) ---
    n_pad = ((N + 127) // 128) * 128
    x3 = x_nchw[..., 0]                                   # [B, D_in, N] (free)
    if n_pad != N:
        x3 = jnp.pad(x3, ((0, 0), (0, 0), (0, n_pad - N)))

    if tile_n is None:
        tile_n = _pick_tile_n(n_pad, B, avail, per_lane)
    assert n_pad % tile_n == 0 and tile_n % 128 == 0, (N, n_pad, tile_n)
    grid = (B, n_pad // tile_n)

    const = lambda b, n: (0, 0)   # resident operands: constant block index

    def build_in_specs(resident_kwargs):
        wspec = lambda shape: pl.BlockSpec(shape, const, **resident_kwargs)
        specs = [
            pl.BlockSpec((1, D_in, tile_n), lambda b, n: (b, 0, n)),   # x
            wspec((H, D_in)),                                          # wg
            wspec((H, 1)),                                             # bg
            wspec((H, D_in)),                                          # wv
            wspec((H, 1)),                                             # bv
            wspec((H, H)),                                             # w2
            wspec((H, 1)),                                             # b2
        ]
        if has_adjust:
            specs += [wspec((H, D_in)), wspec((H, 1))]                 # wa, ba
        return specs

    args = [x3, wg, bg, wv, bv, w2, b2]
    if has_adjust:
        args += [prepped["wa"], prepped["ba"]]

    kernel = functools.partial(_gated_mlp_kernel, has_adjust=has_adjust)

    flops = 2 * B * n_pad * weight_elems + 4 * B * n_pad * H
    transcendentals = B * n_pad * H                       # sigmoid
    bytes_accessed = (x3.size * x_itemsize + B * H * n_pad * out_itemsize
                      + weight_elems * w_itemsize + n_bias * H * 4)

    def run(single_buffer_resident: bool):
        kw = {"pipeline_mode": pl.Buffered(1)} if single_buffer_resident else {}
        return pl.pallas_call(
            kernel,
            out_shape=jax.ShapeDtypeStruct((B, H, n_pad), x_nchw.dtype),
            grid=grid,
            in_specs=build_in_specs(kw),
            out_specs=pl.BlockSpec((1, H, tile_n), lambda b, n: (b, 0, n)),
            compiler_params=pltpu.CompilerParams(
                dimension_semantics=("parallel", "parallel"),
                vmem_limit_bytes=int(budget),
            ),
            cost_estimate=pl.CostEstimate(
                flops=int(flops),
                transcendentals=int(transcendentals),
                bytes_accessed=int(bytes_accessed)),
        )(*args)

    try:
        # Single-buffer constant-index operands (halves resident-weight VMEM).
        out3 = run(True)
    except Exception:
        # Safety net: fall back to default double-buffering if this JAX build
        # rejects pl.Buffered(1) on constant-index BlockSpecs.
        out3 = run(False)

    if n_pad != N:
        out3 = out3[:, :, :N]
    return out3[..., None]                                 # [B, H, N, 1]


# --------------------------------------------------------------------------
# Params / reference / checks
# --------------------------------------------------------------------------
def init_params(key, input_dim, hidden_dim, dtype=jnp.float32):
    """Parameters in the PyTorch conv orientation: weight[out, in], bias[out]."""
    k1, k2, k3, k4, k5, k6 = jax.random.split(key, 6)

    def u(k, shape, fan_in):
        bound = 1.0 / jnp.sqrt(fan_in)
        return jax.random.uniform(k, shape, dtype, -bound, bound)

    params = {
        "w1": u(k1, (2 * hidden_dim, input_dim), input_dim),
        "b1": u(k2, (2 * hidden_dim,), input_dim),
        "w2": u(k3, (hidden_dim, hidden_dim), hidden_dim),
        "b2": u(k4, (hidden_dim,), hidden_dim),
    }
    if input_dim != hidden_dim:
        params["wa"] = u(k5, (hidden_dim, input_dim), input_dim)
        params["ba"] = u(k6, (hidden_dim,), input_dim)
    # input_dim == hidden_dim -> adjust_dim is nn.Identity(): no params at all.
    return params


def reference(x_nchw, params):
    """Pure-JAX f32 reference (eval mode: dropout = identity)."""
    x = x_nchw[..., 0]                                          # [B, D_in, N]
    H = params["w2"].shape[0]
    h = jnp.einsum("oi,bin->bon", params["w1"], x) + params["b1"][None, :, None]
    gate, value = h[:, :H], h[:, H:]
    gated = gate * jax.nn.sigmoid(gate) * value
    out = jnp.einsum("oi,bin->bon", params["w2"], gated) + params["b2"][None, :, None]
    if "wa" in params:
        res = jnp.einsum("oi,bin->bon", params["wa"], x) + params["ba"][None, :, None]
    else:
        res = x
    return (out + res)[..., None]                               # [B, H, N, 1]


def _check(x, params, atol=5e-2, rtol=5e-2):
    prepped = prepare_params(params)           # one-time weight prep
    y = jax.block_until_ready(gated_mlp(x, prepped))
    y_ref = reference(x, params)
    assert y.shape == y_ref.shape, (y.shape, y_ref.shape)
    # bf16 matmul operands (f32 accumulation) vs an all-f32 reference.
    assert jnp.allclose(y, y_ref, atol=atol, rtol=rtol), \
        float(jnp.max(jnp.abs(y - y_ref)))
    return y


if __name__ == "__main__":
    key = jax.random.PRNGKey(0)
    k1, k2, k3, k4 = jax.random.split(key, 4)

    # Case 1: D_in != hidden -> adjust_dim is a real 1x1 conv residual.
    #         N=16 exercises the pad-to-128-lanes path.
    B, D_in, N, H = 2, 4, 16, 32
    x = jax.random.normal(k1, (B, D_in, N, 1), jnp.float32)
    params = init_params(k2, D_in, H)
    y = _check(x, params)
    assert y.shape == (B, H, N, 1), y.shape

    # Case 2: D_in == hidden -> adjust_dim is nn.Identity(); the kernel skips
    #         that matmul entirely and uses an exact f32 residual add.
    B2, D2, N2 = 2, 32, 128
    x2 = jax.random.normal(k3, (B2, D2, N2, 1), jnp.float32)
    params2 = init_params(k4, D2, D2)
    y2 = _check(x2, params2)
    assert y2.shape == (B2, D2, N2, 1), y2.shape

    print("KERNEL_OK")
</pallas_src>

<mosaic_0001>
module attributes {stable_mosaic.version = 11 : i64} {
  func.func @_gated_mlp_kernel(%arg0: i32, %arg1: i32, %arg2: memref<1x4x128xf32, #tpu.memory_space<vmem>>, %arg3: memref<32x4xbf16, #tpu.memory_space<vmem>>, %arg4: memref<32x1xf32, #tpu.memory_space<vmem>>, %arg5: memref<32x4xbf16, #tpu.memory_space<vmem>>, %arg6: memref<32x1xf32, #tpu.memory_space<vmem>>, %arg7: memref<32x32xbf16, #tpu.memory_space<vmem>>, %arg8: memref<32x1xf32, #tpu.memory_space<vmem>>, %arg9: memref<32x4xbf16, #tpu.memory_space<vmem>>, %arg10: memref<32x1xf32, #tpu.memory_space<vmem>>, %arg11: memref<1x32x128xf32, #tpu.memory_space<vmem>>) attributes {dimension_semantics = [#tpu.dimension_semantics<parallel>, #tpu.dimension_semantics<parallel>], iteration_bounds = array<i64: 2, 1>, scalar_prefetch = 0 : i64, scratch_operands = 0 : i64, tpu.core_type = #tpu.core_type<tc>, window_params = [{transform_indices = @transform_0, window_bounds = array<i64: 1, 4, 128>}, {pipeline_mode = #tpu.pipeline_mode<synchronous>, transform_indices = @transform_1, window_bounds = array<i64: 32, 4>}, {pipeline_mode = #tpu.pipeline_mode<synchronous>, transform_indices = @transform_2, window_bounds = array<i64: 32, 1>}, {pipeline_mode = #tpu.pipeline_mode<synchronous>, transform_indices = @transform_3, window_bounds = array<i64: 32, 4>}, {pipeline_mode = #tpu.pipeline_mode<synchronous>, transform_indices = @transform_4, window_bounds = array<i64: 32, 1>}, {pipeline_mode = #tpu.pipeline_mode<synchronous>, transform_indices = @transform_5, window_bounds = array<i64: 32, 32>}, {pipeline_mode = #tpu.pipeline_mode<synchronous>, transform_indices = @transform_6, window_bounds = array<i64: 32, 1>}, {pipeline_mode = #tpu.pipeline_mode<synchronous>, transform_indices = @transform_7, window_bounds = array<i64: 32, 4>}, {pipeline_mode = #tpu.pipeline_mode<synchronous>, transform_indices = @transform_8, window_bounds = array<i64: 32, 1>}, {transform_indices = @transform_9, window_bounds = array<i64: 1, 32, 128>}]} {
    %c0 = arith.constant 0 : index
    %c0_0 = arith.constant 0 : index
    %c0_1 = arith.constant 0 : index
    %0 = vector.load %arg2[%c0, %c0_0, %c0_1] : memref<1x4x128xf32, #tpu.memory_space<vmem>>, vector<1x4x128xf32>
    %1 = vector.shape_cast %0 : vector<1x4x128xf32> to vector<4x128xf32>
    %2 = arith.truncf %1 : vector<4x128xf32> to vector<4x128xbf16>
    %c0_2 = arith.constant 0 : index
    %c0_3 = arith.constant 0 : index
    %3 = vector.load %arg3[%c0_2, %c0_3] : memref<32x4xbf16, #tpu.memory_space<vmem>>, vector<32x4xbf16>
    %cst = arith.constant dense<0.000000e+00> : vector<32x128xf32>
    %4 = tpu.matmul %3, %2, %cst {dimension_numbers = #tpu.dot_dimension_numbers<[1], [0], [0], [1], [0, 0, 1, 1], [], []>} : vector<32x4xbf16>, vector<4x128xbf16>, vector<32x128xf32> -> vector<32x128xf32>
    %c0_4 = arith.constant 0 : index
    %c0_5 = arith.constant 0 : index
    %5 = vector.load %arg4[%c0_4, %c0_5] : memref<32x1xf32, #tpu.memory_space<vmem>>, vector<32x1xf32>
    %6 = vector.broadcast %5 : vector<32x1xf32> to vector<32x128xf32>
    %7 = arith.addf %4, %6 : vector<32x128xf32>
    %c0_6 = arith.constant 0 : index
    %c0_7 = arith.constant 0 : index
    %8 = vector.load %arg5[%c0_6, %c0_7] : memref<32x4xbf16, #tpu.memory_space<vmem>>, vector<32x4xbf16>
    %cst_8 = arith.constant dense<0.000000e+00> : vector<32x128xf32>
    %9 = tpu.matmul %8, %2, %cst_8 {dimension_numbers = #tpu.dot_dimension_numbers<[1], [0], [0], [1], [0, 0, 1, 1], [], []>} : vector<32x4xbf16>, vector<4x128xbf16>, vector<32x128xf32> -> vector<32x128xf32>
    %c0_9 = arith.constant 0 : index
    %c0_10 = arith.constant 0 : index
    %10 = vector.load %arg6[%c0_9, %c0_10] : memref<32x1xf32, #tpu.memory_space<vmem>>, vector<32x1xf32>
    %11 = vector.broadcast %10 : vector<32x1xf32> to vector<32x128xf32>
    %12 = arith.addf %9, %11 : vector<32x128xf32>
    %13 = arith.negf %7 : vector<32x128xf32>
    %14 = math.exp %13 : vector<32x128xf32>
    %cst_11 = arith.constant 1.000000e+00 : f32
    %15 = vector.broadcast %cst_11 : f32 to vector<32x128xf32>
    %16 = arith.addf %15, %14 : vector<32x128xf32>
    %17 = arith.divf %15, %16 : vector<32x128xf32>
    %18 = arith.mulf %7, %17 : vector<32x128xf32>
    %19 = arith.mulf %18, %12 : vector<32x128xf32>
    %c0_12 = arith.constant 0 : index
    %c0_13 = arith.constant 0 : index
    %20 = vector.load %arg7[%c0_12, %c0_13] : memref<32x32xbf16, #tpu.memory_space<vmem>>, vector<32x32xbf16>
    %21 = arith.truncf %19 : vector<32x128xf32> to vector<32x128xbf16>
    %cst_14 = arith.constant dense<0.000000e+00> : vector<32x128xf32>
    %22 = tpu.matmul %20, %21, %cst_14 {dimension_numbers = #tpu.dot_dimension_numbers<[1], [0], [0], [1], [0, 0, 1, 1], [], []>} : vector<32x32xbf16>, vector<32x128xbf16>, vector<32x128xf32> -> vector<32x128xf32>
    %c0_15 = arith.constant 0 : index
    %c0_16 = arith.constant 0 : index
    %23 = vector.load %arg8[%c0_15, %c0_16] : memref<32x1xf32, #tpu.memory_space<vmem>>, vector<32x1xf32>
    %24 = vector.broadcast %23 : vector<32x1xf32> to vector<32x128xf32>
    %25 = arith.addf %22, %24 : vector<32x128xf32>
    %c0_17 = arith.constant 0 : index
    %c0_18 = arith.constant 0 : index
    %26 = vector.load %arg9[%c0_17, %c0_18] : memref<32x4xbf16, #tpu.memory_space<vmem>>, vector<32x4xbf16>
    %cst_19 = arith.constant dense<0.000000e+00> : vector<32x128xf32>
    %27 = tpu.matmul %26, %2, %cst_19 {dimension_numbers = #tpu.dot_dimension_numbers<[1], [0], [0], [1], [0, 0, 1, 1], [], []>} : vector<32x4xbf16>, vector<4x128xbf16>, vector<32x128xf32> -> vector<32x128xf32>
    %c0_20 = arith.constant 0 : index
    %c0_21 = arith.constant 0 : index
    %28 = vector.load %arg10[%c0_20, %c0_21] : memref<32x1xf32, #tpu.memory_space<vmem>>, vector<32x1xf32>
    %29 = vector.broadcast %28 : vector<32x1xf32> to vector<32x128xf32>
    %30 = arith.addf %27, %29 : vector<32x128xf32>
    %31 = arith.addf %25, %30 : vector<32x128xf32>
    %c0_22 = arith.constant 0 : index
    %c0_23 = arith.constant 0 : index
    %c0_24 = arith.constant 0 : index
    %32 = vector.load %arg11[%c0_22, %c0_23, %c0_24] : memref<1x32x128xf32, #tpu.memory_space<vmem>>, vector<1x32x128xf32>
    %33 = vector.shape_cast %32 : vector<1x32x128xf32> to vector<32x128xf32>
    %34 = vector.shape_cast %31 : vector<32x128xf32> to vector<1x32x128xf32>
    tpu.vector_store %arg11[%c0_22, %c0_23, %c0_24], %34 {strides = array<i32>} : memref<1x32x128xf32, #tpu.memory_space<vmem>>, vector<1x32x128xf32>,
    return
  }
  func.func @transform_0(%arg0: i32, %arg1: i32) -> (i32, i32, i32) {
    %c0_i32 = arith.constant 0 : i32
    %c0_i32_0 = arith.constant 0 : i32
    return %arg0, %c0_i32, %arg1 : i32, i32, i32
  }
  func.func @transform_1(%arg0: i32, %arg1: i32) -> (i32, i32) {
    %c0_i32 = arith.constant 0 : i32
    %c0_i32_0 = arith.constant 0 : i32
    %c0_i32_1 = arith.constant 0 : i32
    return %c0_i32, %c0_i32_0 : i32, i32
  }
  func.func @transform_2(%arg0: i32, %arg1: i32) -> (i32, i32) {
    %c0_i32 = arith.constant 0 : i32
    %c0_i32_0 = arith.constant 0 : i32
    %c0_i32_1 = arith.constant 0 : i32
    return %c0_i32, %c0_i32_0 : i32, i32
  }
  func.func @transform_3(%arg0: i32, %arg1: i32) -> (i32, i32) {
    %c0_i32 = arith.constant 0 : i32
    %c0_i32_0 = arith.constant 0 : i32
    %c0_i32_1 = arith.constant 0 : i32
    return %c0_i32, %c0_i32_0 : i32, i32
  }
  func.func @transform_4(%arg0: i32, %arg1: i32) -> (i32, i32) {
    %c0_i32 = arith.constant 0 : i32
    %c0_i32_0 = arith.constant 0 : i32
    %c0_i32_1 = arith.constant 0 : i32
    return %c0_i32, %c0_i32_0 : i32, i32
  }
  func.func @transform_5(%arg0: i32, %arg1: i32) -> (i32, i32) {
    %c0_i32 = arith.constant 0 : i32
    %c0_i32_0 = arith.constant 0 : i32
    %c0_i32_1 = arith.constant 0 : i32
    return %c0_i32, %c0_i32_0 : i32, i32
  }
  func.func @transform_6(%arg0: i32, %arg1: i32) -> (i32, i32) {
    %c0_i32 = arith.constant 0 : i32
    %c0_i32_0 = arith.constant 0 : i32
    %c0_i32_1 = arith.constant 0 : i32
    return %c0_i32, %c0_i32_0 : i32, i32
  }
  func.func @transform_7(%arg0: i32, %arg1: i32) -> (i32, i32) {
    %c0_i32 = arith.constant 0 : i32
    %c0_i32_0 = arith.constant 0 : i32
    %c0_i32_1 = arith.constant 0 : i32
    return %c0_i32, %c0_i32_0 : i32, i32
  }
  func.func @transform_8(%arg0: i32, %arg1: i32) -> (i32, i32) {
    %c0_i32 = arith.constant 0 : i32
    %c0_i32_0 = arith.constant 0 : i32
    %c0_i32_1 = arith.constant 0 : i32
    return %c0_i32, %c0_i32_0 : i32, i32
  }
  func.func @transform_9(%arg0: i32, %arg1: i32) -> (i32, i32, i32) {
    %c0_i32 = arith.constant 0 : i32
    %c0_i32_0 = arith.constant 0 : i32
    return %arg0, %c0_i32, %arg1 : i32, i32, i32
  }
}

module attributes {stable_mosaic.version = 11 : i64} {
  func.func @_gated_mlp_kernel(%arg0: i32, %arg1: i32, %arg2: memref<1x4x128xf32, #tpu.memory_space<vmem>>, %arg3: memref<32x4xbf16, #tpu.memory_space<vmem>>, %arg4: memref<32x1xf32, #tpu.memory_space<vmem>>, %arg5: memref<32x4xbf16, #tpu.memory_space<vmem>>, %arg6: memref<32x1xf32, #tpu.memory_space<vmem>>, %arg7: memref<32x32xbf16, #tpu.memory_space<vmem>>, %arg8: memref<32x1xf32, #tpu.memory_space<vmem>>, %arg9: memref<32x4xbf16, #tpu.memory_space<vmem>>, %arg10: memref<32x1xf32, #tpu.memory_space<vmem>>, %arg11: memref<1x32x128xf32, #tpu.memory_space<vmem>>) attributes {dimension_semantics = [#tpu.dimension_semantics<parallel>, #tpu.dimension_semantics<parallel>], iteration_bounds = array<i64: 2, 1>, scalar_prefetch = 0 : i64, scratch_operands = 0 : i64, tpu.core_type = #tpu.core_type<tc>, window_params = [{transform_indices = @transform_0, window_bounds = array<i64: 1, 4, 128>}, {pipeline_mode = #tpu.pipeline_mode<synchronous>, transform_indices = @transform_1, window_bounds = array<i64: 32, 4>}, {pipeline_mode = #tpu.pipeline_mode<synchronous>, transform_indices = @transform_2, window_bounds = array<i64: 32, 1>}, {pipeline_mode = #tpu.pipeline_mode<synchronous>, transform_indices = @transform_3, window_bounds = array<i64: 32, 4>}, {pipeline_mode = #tpu.pipeline_mode<synchronous>, transform_indices = @transform_4, window_bounds = array<i64: 32, 1>}, {pipeline_mode = #tpu.pipeline_mode<synchronous>, transform_indices = @transform_5, window_bounds = array<i64: 32, 32>}, {pipeline_mode = #tpu.pipeline_mode<synchronous>, transform_indices = @transform_6, window_bounds = array<i64: 32, 1>}, {pipeline_mode = #tpu.pipeline_mode<synchronous>, transform_indices = @transform_7, window_bounds = array<i64: 32, 4>}, {pipeline_mode = #tpu.pipeline_mode<synchronous>, transform_indices = @transform_8, window_bounds = array<i64: 32, 1>}, {transform_indices = @transform_9, window_bounds = array<i64: 1, 32, 128>}]} {
    %c0 = arith.constant 0 : index
    %c0_0 = arith.constant 0 : index
    %c0_1 = arith.constant 0 : index
    %0 = vector.load %arg2[%c0, %c0_0, %c0_1] : memref<1x4x128xf32, #tpu.memory_space<vmem>>, vector<1x4x128xf32>
    %1 = vector.shape_cast %0 : vector<1x4x128xf32> to vector<4x128xf32>
    %2 = arith.truncf %1 : vector<4x128xf32> to vector<4x128xbf16>
    %c0_2 = arith.constant 0 : index
    %c0_3 = arith.constant 0 : index
    %3 = vector.load %arg3[%c0_2, %c0_3] : memref<32x4xbf16, #tpu.memory_space<vmem>>, vector<32x4xbf16>
    %cst = arith.constant dense<0.000000e+00> : vector<32x128xf32>
    %4 = tpu.matmul %3, %2, %cst {dimension_numbers = #tpu.dot_dimension_numbers<[1], [0], [0], [1], [0, 0, 1, 1], [], []>} : vector<32x4xbf16>, vector<4x128xbf16>, vector<32x128xf32> -> vector<32x128xf32>
    %c0_4 = arith.constant 0 : index
    %c0_5 = arith.constant 0 : index
    %5 = vector.load %arg4[%c0_4, %c0_5] : memref<32x1xf32, #tpu.memory_space<vmem>>, vector<32x1xf32>
    %6 = vector.broadcast %5 : vector<32x1xf32> to vector<32x128xf32>
    %7 = arith.addf %4, %6 : vector<32x128xf32>
    %c0_6 = arith.constant 0 : index
    %c0_7 = arith.constant 0 : index
    %8 = vector.load %arg5[%c0_6, %c0_7] : memref<32x4xbf16, #tpu.memory_space<vmem>>, vector<32x4xbf16>
    %cst_8 = arith.constant dense<0.000000e+00> : vector<32x128xf32>
    %9 = tpu.matmul %8, %2, %cst_8 {dimension_numbers = #tpu.dot_dimension_numbers<[1], [0], [0], [1], [0, 0, 1, 1], [], []>} : vector<32x4xbf16>, vector<4x128xbf16>, vector<32x128xf32> -> vector<32x128xf32>
    %c0_9 = arith.constant 0 : index
    %c0_10 = arith.constant 0 : index
    %10 = vector.load %arg6[%c0_9, %c0_10] : memref<32x1xf32, #tpu.memory_space<vmem>>, vector<32x1xf32>
    %11 = vector.broadcast %10 : vector<32x1xf32> to vector<32x128xf32>
    %12 = arith.addf %9, %11 : vector<32x128xf32>
    %13 = arith.negf %7 : vector<32x128xf32>
    %14 = math.exp %13 : vector<32x128xf32>
    %cst_11 = arith.constant 1.000000e+00 : f32
    %15 = vector.broadcast %cst_11 : f32 to vector<32x128xf32>
    %16 = arith.addf %15, %14 : vector<32x128xf32>
    %17 = arith.divf %15, %16 : vector<32x128xf32>
    %18 = arith.mulf %7, %17 : vector<32x128xf32>
    %19 = arith.mulf %18, %12 : vector<32x128xf32>
    %c0_12 = arith.constant 0 : index
    %c0_13 = arith.constant 0 : index
    %20 = vector.load %arg7[%c0_12, %c0_13] : memref<32x32xbf16, #tpu.memory_space<vmem>>, vector<32x32xbf16>
    %21 = arith.truncf %19 : vector<32x128xf32> to vector<32x128xbf16>
    %cst_14 = arith.constant dense<0.000000e+00> : vector<32x128xf32>
    %22 = tpu.matmul %20, %21, %cst_14 {dimension_numbers = #tpu.dot_dimension_numbers<[1], [0], [0], [1], [0, 0, 1, 1], [], []>} : vector<32x32xbf16>, vector<32x128xbf16>, vector<32x128xf32> -> vector<32x128xf32>
    %c0_15 = arith.constant 0 : index
    %c0_16 = arith.constant 0 : index
    %23 = vector.load %arg8[%c0_15, %c0_16] : memref<32x1xf32, #tpu.memory_space<vmem>>, vector<32x1xf32>
    %24 = vector.broadcast %23 : vector<32x1xf32> to vector<32x128xf32>
    %25 = arith.addf %22, %24 : vector<32x128xf32>
    %c0_17 = arith.constant 0 : index
    %c0_18 = arith.constant 0 : index
    %26 = vector.load %arg9[%c0_17, %c0_18] : memref<32x4xbf16, #tpu.memory_space<vmem>>, vector<32x4xbf16>
    %cst_19 = arith.constant dense<0.000000e+00> : vector<32x128xf32>
    %27 = tpu.matmul %26, %2, %cst_19 {dimension_numbers = #tpu.dot_dimension_numbers<[1], [0], [0], [1], [0, 0, 1, 1], [], []>} : vector<32x4xbf16>, vector<4x128xbf16>, vector<32x128xf32> -> vector<32x128xf32>
    %c0_20 = arith.constant 0 : index
    %c0_21 = arith.constant 0 : index
    %28 = vector.load %arg10[%c0_20, %c0_21] : memref<32x1xf32, #tpu.memory_space<vmem>>, vector<32x1xf32>
    %29 = vector.broadcast %28 : vector<32x1xf32> to vector<32x128xf32>
    %30 = arith.addf %27, %29 : vector<32x128xf32>
    %31 = arith.addf %25, %30 : vector<32x128xf32>
    %c0_22 = arith.constant 0 : index
    %c0_23 = arith.constant 0 : index
    %c0_24 = arith.constant 0 : index
    %32 = vector.load %arg11[%c0_22, %c0_23, %c0_24] : memref<1x32x128xf32, #tpu.memory_space<vmem>>, vector<1x32x128xf32>
    %33 = vector.shape_cast %32 : vector<1x32x128xf32> to vector<32x128xf32>
    %34 = vector.shape_cast %31 : vector<32x128xf32> to vector<1x32x128xf32>
    tpu.vector_store %arg11[%c0_22, %c0_23, %c0_24], %34 {strides = array<i32>} : memref<1x32x128xf32, #tpu.memory_space<vmem>>, vector<1x32x128xf32>,
    return
  }
  func.func @transform_0(%arg0: i32, %arg1: i32) -> (i32, i32, i32) {
    %c0_i32 = arith.constant 0 : i32
    %c0_i32_0 = arith.constant 0 : i32
    return %arg0, %c0_i32, %arg1 : i32, i32, i32
  }
  func.func @transform_1(%arg0: i32, %arg1: i32) -> (i32, i32) {
    %c0_i32 = arith.constant 0 : i32
    %c0_i32_0 = arith.constant 0 : i32
    %c0_i32_1 = arith.constant 0 : i32
    return %c0_i32, %c0_i32_0 : i32, i32
  }
  func.func @transform_2(%arg0: i32, %arg1: i32) -> (i32, i32) {
    %c0_i32 = arith.constant 0 : i32
    %c0_i32_0 = arith.constant 0 : i32
    %c0_i32_1 = arith.constant 0 : i32
    return %c0_i32, %c0_i32_0 : i32, i32
  }
  func.func @transform_3(%arg0: i32, %arg1: i32) -> (i32, i32) {
    %c0_i32 = arith.constant 0 : i32
    %c0_i32_0 = arith.constant 0 : i32
    %c0_i32_1 = arith.constant 0 : i32
    return %c0_i32, %c0_i32_0 : i32, i32
  }
  func.func @transform_4(%arg0: i32, %arg1: i32) -> (i32, i32) {
    %c0_i32 = arith.constant 0 : i32
    %c0_i32_0 = arith.constant 0 : i32
    %c0_i32_1 = arith.constant 0 : i32
    return %c0_i32, %c0_i32_0 : i32, i32
  }
  func.func @transform_5(%arg0: i32, %arg1: i32) -> (i32, i32) {
    %c0_i32 = arith.constant 0 : i32
    %c0_i32_0 = arith.constant 0 : i32
    %c0_i32_1 = arith.constant 0 : i32
    return %c0_i32, %c0_i32_0 : i32, i32
  }
  func.func @transform_6(%arg0: i32, %arg1: i32) -> (i32, i32) {
    %c0_i32 = arith.constant 0 : i32
    %c0_i32_0 = arith.constant 0 : i32
    %c0_i32_1 = arith.constant 0 : i32
    return %c0_i32, %c0_i32_0 : i32, i32
  }
  func.func @transform_7(%arg0: i32, %arg1: i32) -> (i32, i32) {
    %c0_i32 = arith.constant 0 : i32
    %c0_i32_0 = arith.constant 0 : i32
    %c0_i32_1 = arith.constant 0 : i32
    return %c0_i32, %c0_i32_0 : i32, i32
  }
  func.func @transform_8(%arg0: i32, %arg1: i32) -> (i32, i32) {
    %c0_i32 = arith.constant 0 : i32
    %c0_i32_0 = arith.constant 0 : i32
    %c0_i32_1 = arith.constant 0 : i32
    return %c0_i32, %c0_i32_0 : i32, i32
  }
  func.func @transform_9(%arg0: i32, %arg1: i32) -> (i32, i32, i32) {
    %c0_i32 = arith.constant 0 : i32
    %c0_i32_0 = arith.constant 0 : i32
    return %arg0, %c0_i32, %arg1 : i32, i32, i32
  }
}

</mosaic_0001>

<bundles_post_ra>
// kernel: tpu_custom_call.1
= control target key start
LH: loop header
LB: loop body
LE: loop exit
PB: predicated region body
PF: predicated region fallthrough
CT: control target
= control target key end

     0   :  { %14 = vsyncpa [#allocation3], 0  ;;  %s1359_s0 = inlined_call_operand.vmem [shape: f32[2,4,128], index: 0, kind: input, shape index: {}]   ;;  %s1360_s1 = inlined_call_operand.vmem [shape: bf16[32,4], index: 1, kind: input, shape index: {}]   ;;  %s1361_s2 = inlined_call_operand.vmem [shape: f32[32,1], index: 2, kind: input, shape index: {}]   ;;  %s1362_s3 = inlined_call_operand.vmem [shape: bf16[32,4], index: 3, kind: input, shape index: {}]   ;;  %s1363_s4 = inlined_call_operand.vmem [shape: f32[32,1], index: 4, kind: input, shape index: {}]   ;;  %s1364_s5 = inlined_call_operand.vmem [shape: bf16[32,32], index: 5, kind: input, shape index: {}]   ;;  %s1365_s6 = inlined_call_operand.vmem [shape: f32[32,1], index: 6, kind: input, shape index: {}]   ;;  %s1366_s7 = inlined_call_operand.vmem [shape: bf16[32,4], index: 7, kind: input, shape index: {}]   ;;  %s1367_s8 = inlined_call_operand.vmem [shape: f32[32,1], index: 8, kind: input, shape index: {}]   ;;  %s1368_s9 = inlined_call_operand.hbm [shape: f32[2,32,128], index: 9, kind: output, shape index: {}]  }
   0x1   :  { %16 = vsyncpa [#allocation3 + $0x1], 0  ;;  %s1157_s30 = smov 0   ;;  %s1159_s10 = smov 0  }
   0x2   :  { %s1161_s11 = smov 0   ;;  %s1163_s12 = smov 0  }
   0x3   :  { %s1165_s13 = smov 0   ;;  %s1167_s14 = smov 0  }
   0x4 LB: > { %s866_s15 = sadd.s32 4294967295, %s1101_s14   ;;  %s867_s16 = sadd.s32 4294967294, %s1101_s14   ;;  %s1101_s14 = sphi %s1167_s14, %s22_s14   ;;  %s1097_s13 = sphi %s1165_s13, %s1375_s13   ;;  %s1093_s12 = sphi %s1163_s12, %s1374_s12   ;;  %s1089_s11 = sphi %s1161_s11, %s1373_s11   ;;  %s1085_s10 = sphi %s1159_s10, %s1372_s10   ;;  %s1081_s30 = sphi %s1157_s30, %s1371_s30  }
   0x5   : > { %s34_s17 = sadd.s32 1, %s1097_s13  ;;  %s239_s18 = sadd.s32 1, %s1089_s11 }
   0x6   : > { %p36_p0 = scmp.ge.s32.totalorder %s34_s17, 2  ;;  %p249_p1 = scmp.ne.s32.totalorder %s1089_s11, %s1085_s10 }
   0x7   : > { %p250_p2 = scmp.eq.s32.totalorder %s866_s15, 1  ;;  %p255_p3 = scmp.ne.s32.totalorder %s1085_s10, %s1081_s30 }
   0x8   : > { %s1377_s17 = smov (%p36_p0, %s34_s17), 0  ;;  %p256_p5 = scmp.eq.s32.totalorder %s867_s16, 1 }
   0x9   : > { %p1197_p4 = por %p250_p2, %p249_p1  ;;  %s234_s20 = ssub.s32 %s1097_s13, %s1377_s17 }
   0xa   : > { %p870_p6 = scmp.ge.s32.totalorder %s1101_s14, 1  ;;  %p237_p7 = scmp.eq.s32.totalorder %s234_s20, 0 }
   0xb   : > { %p1204_p8 = por %p256_p5, %p255_p3  ;;  %p308_p9 = scmp.lt.s32.totalorder %s1101_s14, 3 }
   0xc   : > { %s1210_s22 = scalar_select %p237_p7, %s1089_s11, %s239_s18  }
   0xd   : > { %p309_p10 = pnand %p870_p6, %p308_p9 }
   0xe   : > { %p346_p11 = scmp.lt.s32.totalorder (!%p309_p10), %s1093_s12, 1  ;;  %s343_s18 = sand.u32 (!%p309_p10), 1, %s1085_s10  }
   0xf   : > { %312 = sbr.rel (%p309_p10) target bundleno = 493 (0x1ed), region = 56  ;;  %s871_s20 = sshll.u32 (!%p309_p10), %s343_s18, 5 }
  0x10   : > { %s345_s23 = scalar_lea.vmem (!%p309_p10), [#allocation2], %s871_s20  ;;  %s1104_s15 = smov (!%p309_p10), [#allocation2]  }
  0x11   : > { %s791_s24 = sshll.u32 (!%p309_p10), %s345_s23, 4  ;;  %s1305_s24 = int_to_ptr.vmem [resolvable:$true] %s791_s24 }
  0x12   : > { %s1025_s29 = scalar_lea.vmem (!%p309_p10), %s1305_s24, 512 }
  0x13   : > { %p1026_p12 = scmp.ne.s32.totalorder (!%p309_p10), %s1305_s24, %s1025_s29 }
  0x14   : > { %v1001_v0 = vld [vmem:[%s1360_s1] sm:$0xff]   ;;  %vm394_vm0 = vcmask 31744   ;;  %s347_s25 = scalar_select %p346_p11, %s1093_s12, 1  ;;  %v1103_v2 = vmov 0   ;;  %vm401_vm1 = vcmask 1041408   ;;  %v362_v4 = vld [vmem:[%s1361_s2 + $0x10] sm:$0xff] }
  0x15   : > { %v1002_v1 = vld [vmem:[%s1362_s3] sm:$0xff]   ;;  %914 = vmatprep.mubr.msk.bf16.mxu0 %vm394_vm0, %v1001_v0  ;;  %999 = vset.pattern.permute.xlu0 %v1103_v2  ;;  %v363_v7 = vld [vmem:[%s1361_s2 + $0x18] sm:$0xff]  ;;  %v1003_v9 = vld [vmem:[%s1360_s1 + $0x8] sm:$0xff]   ;;  %vm619_vm2 = vcmask 261120   ;;  %p1027_p13 = pnand %p1026_p12, %p1197_p4 }
  0x16   : > { %s872_s28 = sshll.u32 %s347_s25, 2  ;;  %920 = vmatprep.mubr.msk.bf16.mxu1 %vm394_vm0, %v1002_v1  ;;  %1000 = vset.pattern.permute.xlu1 %v1103_v2  ;;  %v360_v6 = vld [vmem:[%s1361_s2] sm:$0xff]  ;;  %v1004_v10 = vld [vmem:[%s1362_s3 + $0x8] sm:$0xff]   ;;  %v460_v13 = vld [vmem:[%s1363_s4 + $0x10] sm:$0xff]  ;;  %s898_s25 = sshll.u32 %s1093_s12, 9 }
  0x17   : > { %s352_s16 = scalar_lea.vmem %s1359_s0, %s872_s28  ;;  %376 = vperm.xlu0 %999, %v362_v4   ;;  %366 = vperm.xlu1 %1000, %v360_v6   ;;  %v361_v11 = vld [vmem:[%s1361_s2 + $0x8] sm:$0xff]  ;;  %v1005_v12 = vld [vmem:[%s1366_s7] sm:$0xff]   ;;  %v461_v14 = vld [vmem:[%s1363_s4 + $0x18] sm:$0xff]  ;;  %s1310_s28 = scalar_lea.hbm %s1368_s9, %s898_s25 }
  0x18   : > { %v354_v3 = vld [vmem:[%s352_s16] sm:$0xf]  ;;  %v1006_v16 = vld [vmem:[%s1366_s7 + $0x8] sm:$0xff]   ;;  %v587_v20 = vld [vmem:[%s1365_s6 + $0x10] sm:$0xff]  ;;  %s1314_s12 = scalar_lea.sflag [#allocation3], %s343_s18  ;;  %p1028_p0 = pneg %p1027_p13 }
  0x19   : > { %v355_v5 = vpack.c.bf16 %v354_v3, %v354_v3  ;;  %v458_v15 = vld [vmem:[%s1363_s4] sm:$0xff]  ;;  %v459_v17 = vld [vmem:[%s1363_s4 + $0x8] sm:$0xff]  ;;  %v588_v21 = vld [vmem:[%s1365_s6 + $0x18] sm:$0xff]  ;;  %s1029_s16 = sshll.u32 %s1104_s15, 4  ;;  %s1030_s16 = int_to_ptr.vmem [resolvable:$false] %s1029_s16 }
  0x1a   : > { %v585_v18 = vld [vmem:[%s1365_s6] sm:$0xff]  ;;  %v586_v19 = vld [vmem:[%s1365_s6 + $0x8] sm:$0xff]  ;;  %v681_v24 = vld [vmem:[%s1367_s8 + $0x10] sm:$0xff]  ;;  %s1031_s20 = scalar_lea.vmem %s1030_s16, 1024  ;;  %p1032_p1 = scmp.lt.s32.totalorder %s1305_s24, %s1030_s16 }
  0x1b   : > { %938 = vmatprep.subr.msk.bf16.mxu0 %vm401_vm1, %v355_v5  ;;  %939 = vmatprep.subr.msk.bf16.mxu1 %vm401_vm1, %v355_v5  ;;  %v403_v8 = vsel %vm401_vm1, %v355_v5, 0  ;;  %v679_v22 = vld [vmem:[%s1367_s8] sm:$0xff]  ;;  %v680_v23 = vld [vmem:[%s1367_s8 + $0x8] sm:$0xff]  ;;  %v682_v25 = vld [vmem:[%s1367_s8 + $0x18] sm:$0xff]  ;;  %p1033_p2 = scmp.lt.s32.totalorder %s1031_s20, %s1025_s29 }
  0x1c   : > { %913 = vmatpush3.bf16.msra.mxu0 %v403_v8  ;;  %919 = vmatpush3.bf16.msra.mxu1 %v403_v8  ;;  %v1007_v26 = vld [vmem:[%s1364_s5] sm:$0xff]  }
  0x1d   : > { %940 = vmatprep.subr.msk.bf16.mxu1 %vm401_vm1, %v355_v5  ;;  %381 = vperm.xlu0 %999, %v363_v7   ;;  %p1034_p3 = por %p1033_p2, %p1032_p1 }
  0x1e   : > { %371 = vperm.xlu1 %1000, %v361_v11  }
  0x1f   : > { %915 = vmatmul.mubr.msk.bf16.vlgmr.msra.gmra.mxu0 %vm394_vm0, %v1003_v9  ;;  %921 = vmatmul.mubr.msk.bf16.vlgmr.msra.gmra.mxu1 %vm394_vm0, %v1004_v10  ;;  %p1035_p5 = pnand %p1034_p3, %p1028_p0 }
  0x20   : > { %933 = vmatpush3.bf16.msra.mxu1 %v403_v8  ;;  %934 = vmatprep.mubr.msk.bf16.mxu1 %vm394_vm0, %v1005_v12 }
  0x21   : > { %474 = vperm.xlu0 %999, %v460_v13   ;;  %928 = vmatprep.mubr.msk.bf16.mxu0 %vm619_vm2, %v1007_v26  ;;  %v1008_v13 = vld [vmem:[%s1364_s5 + $0x8] sm:$0xff]  }
  0x22   : > { %479 = vperm.xlu1 %1000, %v461_v14  }
  0x25   : > { %464 = vperm.xlu0 %999, %v458_v15  }
  0x26   : > { %469 = vperm.xlu1 %1000, %v459_v17  }
  0x27   : > { %935 = vmatmul.mubr.msk.bf16.vlgmr.msra.gmra.mxu1 %vm394_vm0, %v1006_v16 }
  0x29   : > { %591 = vperm.xlu0 %999, %v585_v18  }
  0x2a   : > { %596 = vperm.xlu1 %1000, %v586_v19  }
  0x2d   : > { %601 = vperm.xlu0 %999, %v587_v20  }
  0x2e   : > { %606 = vperm.xlu1 %1000, %v588_v21  }
  0x31   : > { %685 = vperm.xlu0 %999, %v679_v22  }
  0x32   : > { %690 = vperm.xlu1 %1000, %v680_v23  }
  0x35   : > { %695 = vperm.xlu0 %999, %v681_v24  }
  0x36   : > { %700 = vperm.xlu1 %1000, %v682_v25  }
  0x92   : > { %v377_v27 = vpop.permute.xlu0 %376  ;;  %v367_v28 = vpop.permute.xlu1 %366 }
  0x98   : > { %v382_v34 = vpop.permute.xlu0 %381 }
  0x99   : > { %v372_v38 = vpop.permute.xlu1 %371 }
  0x9c   : > { %v475_v53 = vpop.permute.xlu0 %474 }
  0x9d   : > { %v480_v55 = vpop.permute.xlu1 %479 }
  0xa0   : > { %v465_v61 = vpop.permute.xlu0 %464 }
  0xa1   : > { %v470_v3 = vpop.permute.xlu1 %469 }
  0xa4   : > { %v592_v14 = vpop.permute.xlu0 %591 }
  0xa5   : > { %v597_v15 = vpop.permute.xlu1 %596 }
  0xa8   : > { %v602_v16 = vpop.permute.xlu0 %601 }
  0xa9   : > { %v607_v17 = vpop.permute.xlu1 %606 }
  0xac   : > { %v686_v19 = vpop.permute.xlu0 %685 }
  0xad   : > { %v691_v21 = vpop.permute.xlu1 %690 }
  0xb0   : > { %v696_v22 = vpop.permute.xlu0 %695 }
  0xdf   : > { %v916_v29 = vpop.f32.mrf.mxu0  ;;  %v922_v51 = vpop.f32.mrf.mxu1 }
  0xe0   : > { %v448_v30 = vadd.f32 %v916_v29, %v377_v27  ;;  %v541_v62 = vadd.f32 %v922_v51, %v475_v53 }
  0xe1   : > { %v439_v31 = vpop.f32.mrf.mxu0  ;;  %v532_v52 = vpop.f32.mrf.mxu1 }
  0xe2   : > { %v883_v32 = vmul.f32 -1.442695, %v448_v30  ;;  %v440_v33 = vadd.f32 %v439_v31, %v367_v28  ;;  %v533_v4 = vadd.f32 %v532_v52, %v465_v61  ;;  %v701_v28 = vpop.permute.xlu1 %700 }
  0xe3   : > { %v917_v35 = vpop.f32.mrf.mxu0  ;;  %v923_v56 = vpop.f32.mrf.mxu1 }
  0xe4   : > { %1009 = vpow2.f32 %v883_v32  ;;  %v881_v36 = vmul.f32 -1.442695, %v440_v33  ;;  %v451_v37 = vadd.f32 %v917_v35, %v382_v34  ;;  %v544_v1 = vadd.f32 %v923_v56, %v480_v55 }
  0xe5   : > { %v442_v39 = vpop.f32.mrf.mxu0  ;;  %v535_v60 = vpop.f32.mrf.mxu1 }
  0xe6   : > { %1011 = vpow2.f32 %v881_v36  ;;  %v884_v40 = vmul.f32 -1.442695, %v451_v37  ;;  %v443_v41 = vadd.f32 %v442_v39, %v372_v38  ;;  %v536_v8 = vadd.f32 %v535_v60, %v470_v3 }
  0xe7   : > { %v936_v18 = vpop.f32.mrf.mxu1 }
  0xe8   : > { %1013 = vpow2.f32 %v884_v40  ;;  %v882_v42 = vmul.f32 -1.442695, %v443_v41  ;;  %v762_v25 = vadd.f32 %v936_v18, %v696_v22 }
  0xe9   : > { %v753_v20 = vpop.f32.mrf.mxu1 }
  0xea   : > { %1015 = vpow2.f32 %v882_v42  ;;  %v754_v29 = vadd.f32 %v753_v20, %v686_v19 }
  0xeb   : > { %v937_v23 = vpop.f32.mrf.mxu1 }
  0xec   : > { %v765_v34 = vadd.f32 %v937_v23, %v701_v28 }
  0xed   : > { %v756_v32 = vpop.f32.mrf.mxu1 }
  0xee   : > { %v757_v38 = vadd.f32 %v756_v32, %v691_v21 }
  0xf1   : > { %v1010_v43 = vpop.eup %1009 }
  0xf2   : > { %v561_v44 = vadd.f32 1.0, %v1010_v43 }
  0xf3   : > { %v1012_v45 = vpop.eup %1011 }
  0xf4   : > { %1017 = vrcp.f32 %v561_v44  ;;  %v559_v46 = vadd.f32 1.0, %v1012_v45 }
  0xf5   : > { %v1014_v47 = vpop.eup %1013 }
  0xf6   : > { %1019 = vrcp.f32 %v559_v46  ;;  %v562_v48 = vadd.f32 1.0, %v1014_v47 }
  0xf7   : > { %v1016_v49 = vpop.eup %1015 }
  0xf8   : > { %1021 = vrcp.f32 %v562_v48  ;;  %v560_v50 = vadd.f32 1.0, %v1016_v49 }
  0xfa   : > { %1023 = vrcp.f32 %v560_v50 }
 0x101   : > { %v1018_v54 = vpop.eup %1017 }
 0x102   : > { %v573_v58 = vmul.f32 %v1018_v54, %v448_v30 }
 0x103   : > { %v1020_v57 = vpop.eup %1019 }
 0x104   : > { %v571_v63 = vmul.f32 %v1020_v57, %v440_v33  ;;  %v577_v5 = vmul.f32 %v573_v58, %v541_v62 }
 0x105   : > { %v1022_v59 = vpop.eup %1021 }
 0x106   : > { %v574_v0 = vmul.f32 %v1022_v59, %v451_v37  ;;  %v575_v9 = vmul.f32 %v571_v63, %v533_v4 }
 0x107   : > { %v1024_v2 = vpop.eup %1023 }
 0x108   : > { %v578_v6 = vmul.f32 %v574_v0, %v544_v1  ;;  %v572_v7 = vmul.f32 %v1024_v2, %v443_v41 }
 0x10a   : > { %v576_v10 = vmul.f32 %v572_v7, %v536_v8  ;;  %v584_v11 = vpack.c.bf16 %v578_v6, %v577_v5 }
 0x10c   : > { %924 = vmatprep.subr.bf16.mxu0 %v584_v11  ;;  %v583_v12 = vpack.c.bf16 %v576_v10, %v575_v9 }
 0x10d   : > { %925 = vmatpush3.bf16.msra.mxu0 %v584_v11 }
 0x10e   : > { %926 = vmatprep.subr.bf16.mxu0 %v583_v12 }
 0x111   : > { %927 = vmatpush3.bf16.msra.mxu0 %v583_v12 }
 0x114   : > { %929 = vmatmul.mubr.msk.bf16.vlgmr.msra.gmra.mxu0 %vm619_vm2, %v1008_v13 }
 0x1d4   : > { %v930_v24 = vpop.f32.mrf.mxu0 }
 0x1d5   : > { %v669_v26 = vadd.f32 %v930_v24, %v602_v16 }
 0x1d6   : > { %v660_v27 = vpop.f32.mrf.mxu0 }
 0x1d7   : > { %v770_v30 = vadd.f32 %v762_v25, %v669_v26  ;;  %v661_v31 = vadd.f32 %v660_v27, %v592_v14 }
 0x1d8   : > { %v931_v33 = vpop.f32.mrf.mxu0 }
 0x1d9   : > { %774 = vst [vmem:[%s345_s23 + $0x10] sm:$0xff] %v770_v30  ;;  %v768_v35 = vadd.f32 %v754_v29, %v661_v31  ;;  %v672_v36 = vadd.f32 %v931_v33, %v607_v17 }
 0x1da   : > { %v663_v37 = vpop.f32.mrf.mxu0 }
 0x1db   : > { %772 = vst [vmem:[%s345_s23] sm:$0xff] %v768_v35  ;;  %v771_v39 = vadd.f32 %v765_v34, %v672_v36  ;;  %v664_v40 = vadd.f32 %v663_v37, %v597_v15 }
 0x1dd   : > { %775 = vst [vmem:[%s345_s23 + $0x18] sm:$0xff] %v771_v39  ;;  %v769_v41 = vadd.f32 %v757_v38, %v664_v40 }
 0x1df   : > { %773 = vst [vmem:[%s345_s23 + $0x8] sm:$0xff] %v769_v41 }
 0x1e0   : > { %1038 = shalt.err (!%p1035_p5)
}
 0x1e1   : > { %s1039_s18 = scalar_lea.hbm %s1310_s28, 512  ;;  %s1043_s26 = scalar_lea.hbm %s1368_s9, 1024 }
 0x1e2   : > { %p1040_p6 = scmp.ne.s32.totalorder %s1310_s28, %s1039_s18  ;;  %p1044_p10 = scmp.lt.s32.totalorder %s1310_s28, %s1368_s9 }
 0x1e3   : > { %p1045_p11 = scmp.lt.s32.totalorder %s1043_s26, %s1039_s18 }
 0x1e4   : > { %p1041_p7 = pnand %p1040_p6, %p1197_p4 }
 0x1e5   : > { %p1046_p12 = por %p1045_p11, %p1044_p10 }
 0x1e6   : > { %p1042_p9 = pneg %p1041_p7 }
 0x1e8   : > { %p1047_p13 = pnand %p1046_p12, %p1042_p9 }
 0x1ea   : > { %1050 = shalt.err (!%p1047_p13)
}
 0x1eb   : > { %s1105_s29 = smov 128   ;;  %s1106_s16 = smov 8  }
 0x1ec   : > { %941 = dma.vmem_to_hbm [thread:$0]  (%p1197_p4), %s1305_s24, 512, %s1310_s28, %s1314_s12, %s1105_s29, %s1105_s29, %s1106_s16  }
 0x1ed PF: > { %p947_p0 = scmp.ge.s32.totalorder %s1101_s14, 2  ;;  %s806_s20 = sand.u32 1, %s1081_s30  }
 0x1ee   : > { %s807_s18 = scalar_lea.sflag [#allocation3], %s806_s20 }
 0x1ef   : > { %p944_p1 = pnand %p947_p0, %p1204_p8 }
 0x1f1   : > { %p945_p2 = pneg %p944_p1 }
 0x1f3   : > { %1076 = dma.done.wait (%p945_p2), %s807_s18, 512  }
 0x1f4   : > { %1078 = vsyncadd (%p945_p2), %s807_s18, 4294966784  ;;  %s22_s14 = sadd.s32 1, %s1101_s14   ;;  %s1371_s30 = smov %s1085_s10 }
 0x1f5   : > { %p19_p3 = scmp.ge.s32.totalorder %s22_s14, 4   ;;  %s1372_s10 = smov %s1089_s11 }
 0x1f6   : > { %s1373_s11 = smov %s1210_s22  ;;  %s1374_s12 = smov %s1097_s13 }
 0x1f7   : > { %s1375_s13 = smov %s1377_s17  ;;  %21 = sbr.rel (!%p19_p3) target bundleno = 4 (0x4), region = 91 }
 0x1fc   :  { %812 = vsyncpa [#allocation3], 1 }
 0x1fd   :  { %814 = vsyncpa [#allocation3 + $0x1], 1 }

// kernel: tpu_custom_call.1
= control target key start
LH: loop header
LB: loop body
LE: loop exit
PB: predicated region body
PF: predicated region fallthrough
CT: control target
= control target key end

     0   :  { %14 = vsyncpa [#allocation3], 0  ;;  %s1359_s0 = inlined_call_operand.vmem [shape: f32[2,4,128], index: 0, kind: input, shape index: {}]   ;;  %s1360_s1 = inlined_call_operand.vmem [shape: bf16[32,4], index: 1, kind: input, shape index: {}]   ;;  %s1361_s2 = inlined_call_operand.vmem [shape: f32[32,1], index: 2, kind: input, shape index: {}]   ;;  %s1362_s3 = inlined_call_operand.vmem [shape: bf16[32,4], index: 3, kind: input, shape index: {}]   ;;  %s1363_s4 = inlined_call_operand.vmem [shape: f32[32,1], index: 4, kind: input, shape index: {}]   ;;  %s1364_s5 = inlined_call_operand.vmem [shape: bf16[32,32], index: 5, kind: input, shape index: {}]   ;;  %s1365_s6 = inlined_call_operand.vmem [shape: f32[32,1], index: 6, kind: input, shape index: {}]   ;;  %s1366_s7 = inlined_call_operand.vmem [shape: bf16[32,4], index: 7, kind: input, shape index: {}]   ;;  %s1367_s8 = inlined_call_operand.vmem [shape: f32[32,1], index: 8, kind: input, shape index: {}]   ;;  %s1368_s9 = inlined_call_operand.hbm [shape: f32[2,32,128], index: 9, kind: output, shape index: {}]  }
   0x1   :  { %16 = vsyncpa [#allocation3 + $0x1], 0  ;;  %s1157_s30 = smov 0   ;;  %s1159_s10 = smov 0  }
   0x2   :  { %s1161_s11 = smov 0   ;;  %s1163_s12 = smov 0  }
   0x3   :  { %s1165_s13 = smov 0   ;;  %s1167_s14 = smov 0  }
   0x4 LB: > { %s866_s15 = sadd.s32 4294967295, %s1101_s14   ;;  %s867_s16 = sadd.s32 4294967294, %s1101_s14   ;;  %s1101_s14 = sphi %s1167_s14, %s22_s14   ;;  %s1097_s13 = sphi %s1165_s13, %s1375_s13   ;;  %s1093_s12 = sphi %s1163_s12, %s1374_s12   ;;  %s1089_s11 = sphi %s1161_s11, %s1373_s11   ;;  %s1085_s10 = sphi %s1159_s10, %s1372_s10   ;;  %s1081_s30 = sphi %s1157_s30, %s1371_s30  }
   0x5   : > { %s34_s17 = sadd.s32 1, %s1097_s13  ;;  %s239_s18 = sadd.s32 1, %s1089_s11 }
   0x6   : > { %p36_p0 = scmp.ge.s32.totalorder %s34_s17, 2  ;;  %p249_p1 = scmp.ne.s32.totalorder %s1089_s11, %s1085_s10 }
   0x7   : > { %p250_p2 = scmp.eq.s32.totalorder %s866_s15, 1  ;;  %p255_p3 = scmp.ne.s32.totalorder %s1085_s10, %s1081_s30 }
   0x8   : > { %s1377_s17 = smov (%p36_p0, %s34_s17), 0  ;;  %p256_p5 = scmp.eq.s32.totalorder %s867_s16, 1 }
   0x9   : > { %p1197_p4 = por %p250_p2, %p249_p1  ;;  %s234_s20 = ssub.s32 %s1097_s13, %s1377_s17 }
   0xa   : > { %p870_p6 = scmp.ge.s32.totalorder %s1101_s14, 1  ;;  %p237_p7 = scmp.eq.s32.totalorder %s234_s20, 0 }
   0xb   : > { %p1204_p8 = por %p256_p5, %p255_p3  ;;  %p308_p9 = scmp.lt.s32.totalorder %s1101_s14, 3 }
   0xc   : > { %s1210_s22 = scalar_select %p237_p7, %s1089_s11, %s239_s18  }
   0xd   : > { %p309_p10 = pnand %p870_p6, %p308_p9 }
   0xe   : > { %p346_p11 = scmp.lt.s32.totalorder (!%p309_p10), %s1093_s12, 1  ;;  %s343_s18 = sand.u32 (!%p309_p10), 1, %s1085_s10  }
   0xf   : > { %312 = sbr.rel (%p309_p10) target bundleno = 493 (0x1ed), region = 56  ;;  %s871_s20 = sshll.u32 (!%p309_p10), %s343_s18, 5 }
  0x10   : > { %s345_s23 = scalar_lea.vmem (!%p309_p10), [#allocation2], %s871_s20  ;;  %s1104_s15 = smov (!%p309_p10), [#allocation2]  }
  0x11   : > { %s791_s24 = sshll.u32 (!%p309_p10), %s345_s23, 4  ;;  %s1305_s24 = int_to_ptr.vmem [resolvable:$true] %s791_s24 }
  0x12   : > { %s1025_s29 = scalar_lea.vmem (!%p309_p10), %s1305_s24, 512 }
  0x13   : > { %p1026_p12 = scmp.ne.s32.totalorder (!%p309_p10), %s1305_s24, %s1025_s29 }
  0x14   : > { %v1001_v0 = vld [vmem:[%s1360_s1] sm:$0xff]   ;;  %vm394_vm0 = vcmask 31744   ;;  %s347_s25 = scalar_select %p346_p11, %s1093_s12, 1  ;;  %v1103_v2 = vmov 0   ;;  %vm401_vm1 = vcmask 1041408   ;;  %v362_v4 = vld [vmem:[%s1361_s2 + $0x10] sm:$0xff] }
  0x15   : > { %v1002_v1 = vld [vmem:[%s1362_s3] sm:$0xff]   ;;  %914 = vmatprep.mubr.msk.bf16.mxu0 %vm394_vm0, %v1001_v0  ;;  %999 = vset.pattern.permute.xlu0 %v1103_v2  ;;  %v363_v7 = vld [vmem:[%s1361_s2 + $0x18] sm:$0xff]  ;;  %v1003_v9 = vld [vmem:[%s1360_s1 + $0x8] sm:$0xff]   ;;  %vm619_vm2 = vcmask 261120   ;;  %p1027_p13 = pnand %p1026_p12, %p1197_p4 }
  0x16   : > { %s872_s28 = sshll.u32 %s347_s25, 2  ;;  %920 = vmatprep.mubr.msk.bf16.mxu1 %vm394_vm0, %v1002_v1  ;;  %1000 = vset.pattern.permute.xlu1 %v1103_v2  ;;  %v360_v6 = vld [vmem:[%s1361_s2] sm:$0xff]  ;;  %v1004_v10 = vld [vmem:[%s1362_s3 + $0x8] sm:$0xff]   ;;  %v460_v13 = vld [vmem:[%s1363_s4 + $0x10] sm:$0xff]  ;;  %s898_s25 = sshll.u32 %s1093_s12, 9 }
  0x17   : > { %s352_s16 = scalar_lea.vmem %s1359_s0, %s872_s28  ;;  %376 = vperm.xlu0 %999, %v362_v4   ;;  %366 = vperm.xlu1 %1000, %v360_v6   ;;  %v361_v11 = vld [vmem:[%s1361_s2 + $0x8] sm:$0xff]  ;;  %v1005_v12 = vld [vmem:[%s1366_s7] sm:$0xff]   ;;  %v461_v14 = vld [vmem:[%s1363_s4 + $0x18] sm:$0xff]  ;;  %s1310_s28 = scalar_lea.hbm %s1368_s9, %s898_s25 }
  0x18   : > { %v354_v3 = vld [vmem:[%s352_s16] sm:$0xf]  ;;  %v1006_v16 = vld [vmem:[%s1366_s7 + $0x8] sm:$0xff]   ;;  %v587_v20 = vld [vmem:[%s1365_s6 + $0x10] sm:$0xff]  ;;  %s1314_s12 = scalar_lea.sflag [#allocation3], %s343_s18  ;;  %p1028_p0 = pneg %p1027_p13 }
  0x19   : > { %v355_v5 = vpack.c.bf16 %v354_v3, %v354_v3  ;;  %v458_v15 = vld [vmem:[%s1363_s4] sm:$0xff]  ;;  %v459_v17 = vld [vmem:[%s1363_s4 + $0x8] sm:$0xff]  ;;  %v588_v21 = vld [vmem:[%s1365_s6 + $0x18] sm:$0xff]  ;;  %s1029_s16 = sshll.u32 %s1104_s15, 4  ;;  %s1030_s16 = int_to_ptr.vmem [resolvable:$false] %s1029_s16 }
  0x1a   : > { %v585_v18 = vld [vmem:[%s1365_s6] sm:$0xff]  ;;  %v586_v19 = vld [vmem:[%s1365_s6 + $0x8] sm:$0xff]  ;;  %v681_v24 = vld [vmem:[%s1367_s8 + $0x10] sm:$0xff]  ;;  %s1031_s20 = scalar_lea.vmem %s1030_s16, 1024  ;;  %p1032_p1 = scmp.lt.s32.totalorder %s1305_s24, %s1030_s16 }
  0x1b   : > { %938 = vmatprep.subr.msk.bf16.mxu0 %vm401_vm1, %v355_v5  ;;  %939 = vmatprep.subr.msk.bf16.mxu1 %vm401_vm1, %v355_v5  ;;  %v403_v8 = vsel %vm401_vm1, %v355_v5, 0  ;;  %v679_v22 = vld [vmem:[%s1367_s8] sm:$0xff]  ;;  %v680_v23 = vld [vmem:[%s1367_s8 + $0x8] sm:$0xff]  ;;  %v682_v25 = vld [vmem:[%s1367_s8 + $0x18] sm:$0xff]  ;;  %p1033_p2 = scmp.lt.s32.totalorder %s1031_s20, %s1025_s29 }
  0x1c   : > { %913 = vmatpush3.bf16.msra.mxu0 %v403_v8  ;;  %919 = vmatpush3.bf16.msra.mxu1 %v403_v8  ;;  %v1007_v26 = vld [vmem:[%s1364_s5] sm:$0xff]  }
  0x1d   : > { %940 = vmatprep.subr.msk.bf16.mxu1 %vm401_vm1, %v355_v5  ;;  %381 = vperm.xlu0 %999, %v363_v7   ;;  %p1034_p3 = por %p1033_p2, %p1032_p1 }
  0x1e   : > { %371 = vperm.xlu1 %1000, %v361_v11  }
  0x1f   : > { %915 = vmatmul.mubr.msk.bf16.vlgmr.msra.gmra.mxu0 %vm394_vm0, %v1003_v9  ;;  %921 = vmatmul.mubr.msk.bf16.vlgmr.msra.gmra.mxu1 %vm394_vm0, %v1004_v10  ;;  %p1035_p5 = pnand %p1034_p3, %p1028_p0 }
  0x20   : > { %933 = vmatpush3.bf16.msra.mxu1 %v403_v8  ;;  %934 = vmatprep.mubr.msk.bf16.mxu1 %vm394_vm0, %v1005_v12 }
  0x21   : > { %474 = vperm.xlu0 %999, %v460_v13   ;;  %928 = vmatprep.mubr.msk.bf16.mxu0 %vm619_vm2, %v1007_v26  ;;  %v1008_v13 = vld [vmem:[%s1364_s5 + $0x8] sm:$0xff]  }
  0x22   : > { %479 = vperm.xlu1 %1000, %v461_v14  }
  0x25   : > { %464 = vperm.xlu0 %999, %v458_v15  }
  0x26   : > { %469 = vperm.xlu1 %1000, %v459_v17  }
  0x27   : > { %935 = vmatmul.mubr.msk.bf16.vlgmr.msra.gmra.mxu1 %vm394_vm0, %v1006_v16 }
  0x29   : > { %591 = vperm.xlu0 %999, %v585_v18  }
  0x2a   : > { %596 = vperm.xlu1 %1000, %v586_v19  }
  0x2d   : > { %601 = vperm.xlu0 %999, %v587_v20  }
  0x2e   : > { %606 = vperm.xlu1 %1000, %v588_v21  }
  0x31   : > { %685 = vperm.xlu0 %999, %v679_v22  }
  0x32   : > { %690 = vperm.xlu1 %1000, %v680_v23  }
  0x35   : > { %695 = vperm.xlu0 %999, %v681_v24  }
  0x36   : > { %700 = vperm.xlu1 %1000, %v682_v25  }
  0x92   : > { %v377_v27 = vpop.permute.xlu0 %376  ;;  %v367_v28 = vpop.permute.xlu1 %366 }
  0x98   : > { %v382_v34 = vpop.permute.xlu0 %381 }
  0x99   : > { %v372_v38 = vpop.permute.xlu1 %371 }
  0x9c   : > { %v475_v53 = vpop.permute.xlu0 %474 }
  0x9d   : > { %v480_v55 = vpop.permute.xlu1 %479 }
  0xa0   : > { %v465_v61 = vpop.permute.xlu0 %464 }
  0xa1   : > { %v470_v3 = vpop.permute.xlu1 %469 }
  0xa4   : > { %v592_v14 = vpop.permute.xlu0 %591 }
  0xa5   : > { %v597_v15 = vpop.permute.xlu1 %596 }
  0xa8   : > { %v602_v16 = vpop.permute.xlu0 %601 }
  0xa9   : > { %v607_v17 = vpop.permute.xlu1 %606 }
  0xac   : > { %v686_v19 = vpop.permute.xlu0 %685 }
  0xad   : > { %v691_v21 = vpop.permute.xlu1 %690 }
  0xb0   : > { %v696_v22 = vpop.permute.xlu0 %695 }
  0xdf   : > { %v916_v29 = vpop.f32.mrf.mxu0  ;;  %v922_v51 = vpop.f32.mrf.mxu1 }
  0xe0   : > { %v448_v30 = vadd.f32 %v916_v29, %v377_v27  ;;  %v541_v62 = vadd.f32 %v922_v51, %v475_v53 }
  0xe1   : > { %v439_v31 = vpop.f32.mrf.mxu0  ;;  %v532_v52 = vpop.f32.mrf.mxu1 }
  0xe2   : > { %v883_v32 = vmul.f32 -1.442695, %v448_v30  ;;  %v440_v33 = vadd.f32 %v439_v31, %v367_v28  ;;  %v533_v4 = vadd.f32 %v532_v52, %v465_v61  ;;  %v701_v28 = vpop.permute.xlu1 %700 }
  0xe3   : > { %v917_v35 = vpop.f32.mrf.mxu0  ;;  %v923_v56 = vpop.f32.mrf.mxu1 }
  0xe4   : > { %1009 = vpow2.f32 %v883_v32  ;;  %v881_v36 = vmul.f32 -1.442695, %v440_v33  ;;  %v451_v37 = vadd.f32 %v917_v35, %v382_v34  ;;  %v544_v1 = vadd.f32 %v923_v56, %v480_v55 }
  0xe5   : > { %v442_v39 = vpop.f32.mrf.mxu0  ;;  %v535_v60 = vpop.f32.mrf.mxu1 }
  0xe6   : > { %1011 = vpow2.f32 %v881_v36  ;;  %v884_v40 = vmul.f32 -1.442695, %v451_v37  ;;  %v443_v41 = vadd.f32 %v442_v39, %v372_v38  ;;  %v536_v8 = vadd.f32 %v535_v60, %v470_v3 }
  0xe7   : > { %v936_v18 = vpop.f32.mrf.mxu1 }
  0xe8   : > { %1013 = vpow2.f32 %v884_v40  ;;  %v882_v42 = vmul.f32 -1.442695, %v443_v41  ;;  %v762_v25 = vadd.f32 %v936_v18, %v696_v22 }
  0xe9   : > { %v753_v20 = vpop.f32.mrf.mxu1 }
  0xea   : > { %1015 = vpow2.f32 %v882_v42  ;;  %v754_v29 = vadd.f32 %v753_v20, %v686_v19 }
  0xeb   : > { %v937_v23 = vpop.f32.mrf.mxu1 }
  0xec   : > { %v765_v34 = vadd.f32 %v937_v23, %v701_v28 }
  0xed   : > { %v756_v32 = vpop.f32.mrf.mxu1 }
  0xee   : > { %v757_v38 = vadd.f32 %v756_v32, %v691_v21 }
  0xf1   : > { %v1010_v43 = vpop.eup %1009 }
  0xf2   : > { %v561_v44 = vadd.f32 1.0, %v1010_v43 }
  0xf3   : > { %v1012_v45 = vpop.eup %1011 }
  0xf4   : > { %1017 = vrcp.f32 %v561_v44  ;;  %v559_v46 = vadd.f32 1.0, %v1012_v45 }
  0xf5   : > { %v1014_v47 = vpop.eup %1013 }
  0xf6   : > { %1019 = vrcp.f32 %v559_v46  ;;  %v562_v48 = vadd.f32 1.0, %v1014_v47 }
  0xf7   : > { %v1016_v49 = vpop.eup %1015 }
  0xf8   : > { %1021 = vrcp.f32 %v562_v48  ;;  %v560_v50 = vadd.f32 1.0, %v1016_v49 }
  0xfa   : > { %1023 = vrcp.f32 %v560_v50 }
 0x101   : > { %v1018_v54 = vpop.eup %1017 }
 0x102   : > { %v573_v58 = vmul.f32 %v1018_v54, %v448_v30 }
 0x103   : > { %v1020_v57 = vpop.eup %1019 }
 0x104   : > { %v571_v63 = vmul.f32 %v1020_v57, %v440_v33  ;;  %v577_v5 = vmul.f32 %v573_v58, %v541_v62 }
 0x105   : > { %v1022_v59 = vpop.eup %1021 }
 0x106   : > { %v574_v0 = vmul.f32 %v1022_v59, %v451_v37  ;;  %v575_v9 = vmul.f32 %v571_v63, %v533_v4 }
 0x107   : > { %v1024_v2 = vpop.eup %1023 }
 0x108   : > { %v578_v6 = vmul.f32 %v574_v0, %v544_v1  ;;  %v572_v7 = vmul.f32 %v1024_v2, %v443_v41 }
 0x10a   : > { %v576_v10 = vmul.f32 %v572_v7, %v536_v8  ;;  %v584_v11 = vpack.c.bf16 %v578_v6, %v577_v5 }
 0x10c   : > { %924 = vmatprep.subr.bf16.mxu0 %v584_v11  ;;  %v583_v12 = vpack.c.bf16 %v576_v10, %v575_v9 }
 0x10d   : > { %925 = vmatpush3.bf16.msra.mxu0 %v584_v11 }
 0x10e   : > { %926 = vmatprep.subr.bf16.mxu0 %v583_v12 }
 0x111   : > { %927 = vmatpush3.bf16.msra.mxu0 %v583_v12 }
 0x114   : > { %929 = vmatmul.mubr.msk.bf16.vlgmr.msra.gmra.mxu0 %vm619_vm2, %v1008_v13 }
 0x1d4   : > { %v930_v24 = vpop.f32.mrf.mxu0 }
 0x1d5   : > { %v669_v26 = vadd.f32 %v930_v24, %v602_v16 }
 0x1d6   : > { %v660_v27 = vpop.f32.mrf.mxu0 }
 0x1d7   : > { %v770_v30 = vadd.f32 %v762_v25, %v669_v26  ;;  %v661_v31 = vadd.f32 %v660_v27, %v592_v14 }
 0x1d8   : > { %v931_v33 = vpop.f32.mrf.mxu0 }
 0x1d9   : > { %774 = vst [vmem:[%s345_s23 + $0x10] sm:$0xff] %v770_v30  ;;  %v768_v35 = vadd.f32 %v754_v29, %v661_v31  ;;  %v672_v36 = vadd.f32 %v931_v33, %v607_v17 }
 0x1da   : > { %v663_v37 = vpop.f32.mrf.mxu0 }
 0x1db   : > { %772 = vst [vmem:[%s345_s23] sm:$0xff] %v768_v35  ;;  %v771_v39 = vadd.f32 %v765_v34, %v672_v36  ;;  %v664_v40 = vadd.f32 %v663_v37, %v597_v15 }
 0x1dd   : > { %775 = vst [vmem:[%s345_s23 + $0x18] sm:$0xff] %v771_v39  ;;  %v769_v41 = vadd.f32 %v757_v38, %v664_v40 }
 0x1df   : > { %773 = vst [vmem:[%s345_s23 + $0x8] sm:$0xff] %v769_v41 }
 0x1e0   : > { %1038 = shalt.err (!%p1035_p5)
}
 0x1e1   : > { %s1039_s18 = scalar_lea.hbm %s1310_s28, 512  ;;  %s1043_s26 = scalar_lea.hbm %s1368_s9, 1024 }
 0x1e2   : > { %p1040_p6 = scmp.ne.s32.totalorder %s1310_s28, %s1039_s18  ;;  %p1044_p10 = scmp.lt.s32.totalorder %s1310_s28, %s1368_s9 }
 0x1e3   : > { %p1045_p11 = scmp.lt.s32.totalorder %s1043_s26, %s1039_s18 }
 0x1e4   : > { %p1041_p7 = pnand %p1040_p6, %p1197_p4 }
 0x1e5   : > { %p1046_p12 = por %p1045_p11, %p1044_p10 }
 0x1e6   : > { %p1042_p9 = pneg %p1041_p7 }
 0x1e8   : > { %p1047_p13 = pnand %p1046_p12, %p1042_p9 }
 0x1ea   : > { %1050 = shalt.err (!%p1047_p13)
}
 0x1eb   : > { %s1105_s29 = smov 128   ;;  %s1106_s16 = smov 8  }
 0x1ec   : > { %941 = dma.vmem_to_hbm [thread:$0]  (%p1197_p4), %s1305_s24, 512, %s1310_s28, %s1314_s12, %s1105_s29, %s1105_s29, %s1106_s16  }
 0x1ed PF: > { %p947_p0 = scmp.ge.s32.totalorder %s1101_s14, 2  ;;  %s806_s20 = sand.u32 1, %s1081_s30  }
 0x1ee   : > { %s807_s18 = scalar_lea.sflag [#allocation3], %s806_s20 }
 0x1ef   : > { %p944_p1 = pnand %p947_p0, %p1204_p8 }
 0x1f1   : > { %p945_p2 = pneg %p944_p1 }
 0x1f3   : > { %1076 = dma.done.wait (%p945_p2), %s807_s18, 512  }
 0x1f4   : > { %1078 = vsyncadd (%p945_p2), %s807_s18, 4294966784  ;;  %s22_s14 = sadd.s32 1, %s1101_s14   ;;  %s1371_s30 = smov %s1085_s10 }
 0x1f5   : > { %p19_p3 = scmp.ge.s32.totalorder %s22_s14, 4   ;;  %s1372_s10 = smov %s1089_s11 }
 0x1f6   : > { %s1373_s11 = smov %s1210_s22  ;;  %s1374_s12 = smov %s1097_s13 }
 0x1f7   : > { %s1375_s13 = smov %s1377_s17  ;;  %21 = sbr.rel (!%p19_p3) target bundleno = 4 (0x4), region = 91 }
 0x1fc   :  { %812 = vsyncpa [#allocation3], 1 }
 0x1fd   :  { %814 = vsyncpa [#allocation3 + $0x1], 1 }

</bundles_post_ra>
